<compile_context>
chip_gen: v7x
topology: tpu7x:2x2x1
jax: 0.10.0
libtpu: 0.0.40
codegen_flags: <defaults>
</compile_context>

<pallas_src>
import functools

import jax
import jax.numpy as jnp
from jax import lax
from jax.experimental import pallas as pl
from jax.experimental.pallas import tpu as pltpu

_EPS = 1e-6  # F.pairwise_distance default eps


def _vmem_budget():
    """Generation-aware scoped-VMEM limit and TensorCore count."""
    vmem_cap = None
    num_cores = 1
    try:
        info = pltpu.get_tpu_info()
        cap = getattr(info, "vmem_capacity_bytes", None)
        if cap:
            vmem_cap = int(cap)
        for name in ("num_cores", "core_count", "num_tensorcores",
                     "tensorcores_per_chip"):
            val = getattr(info, name, None)
            if val:
                num_cores = int(val)
                break
    except Exception:
        pass  # no TPU info available -> conservative defaults below
    if vmem_cap is None:
        vmem_cap = 64 * 1024 * 1024          # assume smallest (v7x per-TC) VMEM
    if vmem_cap >= 96 * 1024 * 1024:         # v5e / v6e: 128 MiB physical VMEM
        vmem_limit = 96 * 1024 * 1024
    else:                                    # v7x: 64 MiB per TC (or unknown)
        vmem_limit = 40 * 1024 * 1024
    return vmem_limit, num_cores


def _contrastive_kernel(x1_ref, x2_ref, lab_ref, out_ref, acc_ref, *,
                        margin, batch, block_b, steps, ragged, two_chain):
    if two_chain:
        p = pl.program_id(0)   # partial-sum chain (one per TensorCore)
        i = pl.program_id(1)   # reduction (batch-tile) axis
    else:
        p = 0
        i = pl.program_id(0)

    @pl.when(i == 0)
    def _init():
        acc_ref[...] = jnp.zeros_like(acc_ref)

    # Native-dtype HBM reads; f32 math in-kernel.
    x1 = x1_ref[...].astype(jnp.float32)       # (block_b, D)
    x2 = x2_ref[...].astype(jnp.float32)       # (block_b, D)
    lab = lab_ref[...].astype(jnp.float32)     # (block_b, 1)

    diff = x1 - x2 + _EPS                      # matches torch eps convention
    sq = jnp.sum(diff * diff, axis=-1, keepdims=True)   # (block_b, 1) == d^2
    d = jnp.sqrt(sq)
    hinge = jnp.maximum(margin - d, 0.0)
    per_sample = 0.5 * (lab * sq + (1.0 - lab) * (hinge * hinge))   # (block_b, 1)

    tile_start = (p * steps + i) * block_b

    if ragged:
        # Only the single tile straddling the batch boundary pays for the mask;
        # full tiles accumulate directly (garbage in the clamped final DMA never
        # reaches acc_ref because the where() runs before the accumulate).
        is_edge = tile_start + block_b > batch

        @pl.when(jnp.logical_not(is_edge))
        def _full():
            acc_ref[...] += jnp.sum(per_sample, axis=0, keepdims=True)

        @pl.when(is_edge)
        def _edge():
            row = tile_start + lax.broadcasted_iota(jnp.int32, (block_b, 1), 0)
            masked = jnp.where(row < batch, per_sample, 0.0)
            acc_ref[...] += jnp.sum(masked, axis=0, keepdims=True)
    else:
        acc_ref[...] += jnp.sum(per_sample, axis=0, keepdims=True)

    @pl.when(i == steps - 1)
    def _done():
        # Lane-dense one-shot writeback: broadcast the chain's partial sum
        # across its full (8, 128) output block.
        out_ref[...] = jnp.broadcast_to(acc_ref[...], out_ref.shape)


def contrastive_loss(images1, images2, labels, margin, *, block_b=None):
    """images1, images2: (B, D) arrays (any float dtype). labels: (B,) 0/1.

    Returns the scalar mean contrastive loss (float32)."""
    B, D = images1.shape
    itemsize = jnp.dtype(images1.dtype).itemsize
    sub = {4: 8, 2: 16, 1: 32}.get(itemsize, 8)   # dtype-native sublane tile

    vmem_limit, num_cores = _vmem_budget()

    # --- batch tile sized by bytes against the generation-aware VMEM budget ------
    if block_b is None:
        headroom = 8 * 1024 * 1024                # Mosaic internal scratch, etc.
        per_row = (4 * D * itemsize               # 2 inputs x double-buffer, native dtype
                   + 4 * D * 4                    # f32 upcast / diff / square temporaries
                   + 6 * 512)                     # lane-padded (block_b,1) tail + label tiles
        avail = max(vmem_limit - headroom, per_row * sub)
        rows = max(sub, ((avail // per_row) // sub) * sub)
        block_b = B if rows >= B else rows
    else:
        block_b = min(int(block_b), B)
        if block_b != B:
            block_b = max(sub, (block_b // sub) * sub)

    total_blocks = -(-B // block_b)               # cdiv, no padding of the inputs
    ragged = (B % block_b) != 0
    # Two independent partial-sum chains only when the chip actually has 2 TCs.
    num_parts = 2 if (num_cores >= 2 and total_blocks >= 2
                      and total_blocks % 2 == 0) else 1
    steps = total_blocks // num_parts
    two_chain = num_parts > 1

    lab2 = labels.astype(jnp.float32).reshape(B, 1)

    kernel = functools.partial(
        _contrastive_kernel, margin=float(margin), batch=B,
        block_b=block_b, steps=steps, ragged=ragged, two_chain=two_chain)

    if two_chain:
        grid = (num_parts, steps)
        img_map = lambda p, i: (p * steps + i, 0)
        out_map = lambda p, i: (0, p)
        dim_sem = (pltpu.CORE_PARALLEL, pltpu.ARBITRARY)
    else:
        grid = (steps,)
        img_map = lambda i: (i, 0)
        out_map = lambda i: (0, 0)
        dim_sem = ("arbitrary",)

    cost = pl.CostEstimate(
        flops=int((4 * D + 10) * B),
        transcendentals=int(B),
        bytes_accessed=int(2 * B * D * itemsize + 4 * B + 4096 * num_parts),
    )

    res = pl.pallas_call(
        kernel,
        out_shape=jax.ShapeDtypeStruct((8, num_parts * 128), jnp.float32),
        grid=grid,
        in_specs=[
            pl.BlockSpec((block_b, D), img_map),
            pl.BlockSpec((block_b, D), img_map),
            pl.BlockSpec((block_b, 1), img_map),
        ],
        out_specs=pl.BlockSpec((8, 128), out_map),
        scratch_shapes=[pltpu.VMEM((1, 1), jnp.float32)],
        compiler_params=pltpu.CompilerParams(
            dimension_semantics=dim_sem,
            vmem_limit_bytes=int(vmem_limit)),
        cost_estimate=cost,
    )(images1, images2, lab2)

    # Each chain broadcast its partial sum over its (8, 128) output block.
    partials = res[0, ::128]                      # (num_parts,)
    return jnp.sum(partials) / jnp.float32(B)


def _reference(images1, images2, labels, margin):
    # Pure-JAX reference mirroring the PyTorch forward.
    d = jnp.sqrt(jnp.sum(jnp.square(images1.astype(jnp.float32)
                                    - images2.astype(jnp.float32) + _EPS), axis=-1))
    y = labels.astype(jnp.float32)
    loss = 0.5 * (y * d ** 2
                  + (1.0 - y) * jnp.square(jnp.maximum(margin - d, 0.0)))
    return jnp.mean(loss)


if __name__ == "__main__":
    margin = 2.0  # module hyperparameter

    key = jax.random.PRNGKey(0)
    k1, k2, k3 = jax.random.split(key, 3)

    # Small synthetic embedding shapes consistent with the module's forward.
    B, D = 8, 32
    images1 = jax.random.normal(k1, (B, D), dtype=jnp.float32)
    images2 = jax.random.normal(k2, (B, D), dtype=jnp.float32)
    labels = jax.random.bernoulli(k3, 0.5, (B,)).astype(jnp.int32)

    out = jax.block_until_ready(contrastive_loss(images1, images2, labels, margin))
    ref = _reference(images1, images2, labels, margin)
    assert jnp.allclose(out, ref, rtol=1e-5, atol=1e-5), (out, ref)

    # Batch not a multiple of the sublane tile (single full-batch block, no pad).
    B2 = 10
    k4, k5, k6 = jax.random.split(jax.random.PRNGKey(1), 3)
    a1 = jax.random.normal(k4, (B2, D), dtype=jnp.float32)
    a2 = jax.random.normal(k5, (B2, D), dtype=jnp.float32)
    lb = jax.random.bernoulli(k6, 0.5, (B2,)).astype(jnp.int32)
    out2 = jax.block_until_ready(contrastive_loss(a1, a2, lb, margin))
    ref2 = _reference(a1, a2, lb, margin)
    assert jnp.allclose(out2, ref2, rtol=1e-5, atol=1e-5), (out2, ref2)

    # Multi-step reduction with a ragged final tile (forced small block, no pad).
    B3, D3 = 40, 128
    k7, k8, k9 = jax.random.split(jax.random.PRNGKey(2), 3)
    b1 = jax.random.normal(k7, (B3, D3), dtype=jnp.float32)
    b2 = jax.random.normal(k8, (B3, D3), dtype=jnp.float32)
    lb3 = jax.random.bernoulli(k9, 0.5, (B3,)).astype(jnp.int32)
    out3 = jax.block_until_ready(contrastive_loss(b1, b2, lb3, margin, block_b=16))
    ref3 = _reference(b1, b2, lb3, margin)
    assert jnp.allclose(out3, ref3, rtol=1e-5, atol=1e-5), (out3, ref3)

    # bf16 inputs: native-dtype HBM reads, f32 math in-kernel, ragged + multi-step.
    c1 = b1.astype(jnp.bfloat16)
    c2 = b2.astype(jnp.bfloat16)
    out4 = jax.block_until_ready(contrastive_loss(c1, c2, lb3, margin, block_b=16))
    ref4 = _reference(c1, c2, lb3, margin)
    assert jnp.allclose(out4, ref4, rtol=1e-4, atol=1e-4), (out4, ref4)

    print("KERNEL_OK")
</pallas_src>

<mosaic_0001>
module attributes {stable_mosaic.version = 11 : i64} {
  func.func @_contrastive_kernel(%arg0: i32, %arg1: memref<8x32xf32, #tpu.memory_space<vmem>>, %arg2: memref<8x32xf32, #tpu.memory_space<vmem>>, %arg3: memref<8x1xf32, #tpu.memory_space<vmem>>, %arg4: memref<8x128xf32, #tpu.memory_space<vmem>>, %arg5: memref<1x1xf32, #tpu.memory_space<vmem>>) attributes {dimension_semantics = [#tpu.dimension_semantics<arbitrary>], iteration_bounds = array<i64: 1>, scalar_prefetch = 0 : i64, scratch_operands = 1 : i64, tpu.core_type = #tpu.core_type<tc>, window_params = [{transform_indices = @transform_0, window_bounds = array<i64: 8, 32>}, {transform_indices = @transform_1, window_bounds = array<i64: 8, 32>}, {transform_indices = @transform_2, window_bounds = array<i64: 8, 1>}, {pipeline_mode = #tpu.pipeline_mode<synchronous>, transform_indices = @transform_3, window_bounds = array<i64: 8, 128>}]} {
    %c0_i32 = arith.constant 0 : i32
    %0 = arith.cmpi eq, %arg0, %c0_i32 : i32
    %1 = arith.extui %0 : i1 to i32
    %c0_i32_0 = arith.constant 0 : i32
    %2 = arith.cmpi ne, %1, %c0_i32_0 : i32
    scf.if %2 {
      %cst_18 = arith.constant 0.000000e+00 : f32
      %33 = vector.broadcast %cst_18 : f32 to vector<1x1xf32>
      %c0_19 = arith.constant 0 : index
      %c0_20 = arith.constant 0 : index
      %34 = vector.load %arg5[%c0_19, %c0_20] : memref<1x1xf32, #tpu.memory_space<vmem>>, vector<1x1xf32>
      tpu.vector_store %arg5[%c0_19, %c0_20], %33 {strides = array<i32>} : memref<1x1xf32, #tpu.memory_space<vmem>>, vector<1x1xf32>,
    } else {
    }
    %c0 = arith.constant 0 : index
    %c0_1 = arith.constant 0 : index
    %3 = vector.load %arg1[%c0, %c0_1] : memref<8x32xf32, #tpu.memory_space<vmem>>, vector<8x32xf32>
    %c0_2 = arith.constant 0 : index
    %c0_3 = arith.constant 0 : index
    %4 = vector.load %arg2[%c0_2, %c0_3] : memref<8x32xf32, #tpu.memory_space<vmem>>, vector<8x32xf32>
    %c0_4 = arith.constant 0 : index
    %c0_5 = arith.constant 0 : index
    %5 = vector.load %arg3[%c0_4, %c0_5] : memref<8x1xf32, #tpu.memory_space<vmem>>, vector<8x1xf32>
    %6 = arith.subf %3, %4 : vector<8x32xf32>
    %cst = arith.constant 9.99999997E-7 : f32
    %7 = vector.broadcast %cst : f32 to vector<8x32xf32>
    %8 = arith.addf %6, %7 : vector<8x32xf32>
    %9 = arith.mulf %8, %8 : vector<8x32xf32>
    %cst_6 = arith.constant dense<0.000000e+00> : vector<8xf32>
    %10 = vector.multi_reduction <add>, %9, %cst_6 [1] : vector<8x32xf32> to vector<8xf32>
    %11 = vector.shape_cast %10 : vector<8xf32> to vector<8x1xf32>
    %12 = math.sqrt %11 : vector<8x1xf32>
    %cst_7 = arith.constant 2.000000e+00 : f32
    %13 = vector.broadcast %cst_7 : f32 to vector<8x1xf32>
    %14 = arith.subf %13, %12 : vector<8x1xf32>
    %cst_8 = arith.constant 0.000000e+00 : f32
    %15 = vector.broadcast %cst_8 : f32 to vector<8x1xf32>
    %16 = arith.maximumf %14, %15 : vector<8x1xf32>
    %17 = arith.mulf %5, %11 : vector<8x1xf32>
    %cst_9 = arith.constant 1.000000e+00 : f32
    %18 = vector.broadcast %cst_9 : f32 to vector<8x1xf32>
    %19 = arith.subf %18, %5 : vector<8x1xf32>
    %20 = arith.mulf %16, %16 : vector<8x1xf32>
    %21 = arith.mulf %19, %20 : vector<8x1xf32>
    %22 = arith.addf %17, %21 : vector<8x1xf32>
    %cst_10 = arith.constant 5.000000e-01 : f32
    %23 = vector.broadcast %cst_10 : f32 to vector<8x1xf32>
    %24 = arith.mulf %23, %22 : vector<8x1xf32>
    %c0_11 = arith.constant 0 : index
    %c0_12 = arith.constant 0 : index
    %25 = vector.load %arg5[%c0_11, %c0_12] : memref<1x1xf32, #tpu.memory_space<vmem>>, vector<1x1xf32>
    %cst_13 = arith.constant dense<0.000000e+00> : vector<1xf32>
    %26 = vector.multi_reduction <add>, %24, %cst_13 [0] : vector<8x1xf32> to vector<1xf32>
    %27 = vector.shape_cast %26 : vector<1xf32> to vector<1x1xf32>
    %28 = arith.addf %25, %27 : vector<1x1xf32>
    %c0_14 = arith.constant 0 : index
    %c0_15 = arith.constant 0 : index
    %29 = vector.load %arg5[%c0_14, %c0_15] : memref<1x1xf32, #tpu.memory_space<vmem>>, vector<1x1xf32>
    tpu.vector_store %arg5[%c0_14, %c0_15], %28 {strides = array<i32>} : memref<1x1xf32, #tpu.memory_space<vmem>>, vector<1x1xf32>,
    %c0_i32_16 = arith.constant 0 : i32
    %30 = arith.cmpi eq, %arg0, %c0_i32_16 : i32
    %31 = arith.extui %30 : i1 to i32
    %c0_i32_17 = arith.constant 0 : i32
    %32 = arith.cmpi ne, %31, %c0_i32_17 : i32
    scf.if %32 {
      %c0_18 = arith.constant 0 : index
      %c0_19 = arith.constant 0 : index
      %33 = vector.load %arg5[%c0_18, %c0_19] : memref<1x1xf32, #tpu.memory_space<vmem>>, vector<1x1xf32>
      %34 = vector.shape_cast %33 : vector<1x1xf32> to vector<1x1xf32>
      %35 = vector.broadcast %34 : vector<1x1xf32> to vector<8x128xf32>
      %c0_20 = arith.constant 0 : index
      %c0_21 = arith.constant 0 : index
      %36 = vector.load %arg4[%c0_20, %c0_21] : memref<8x128xf32, #tpu.memory_space<vmem>>, vector<8x128xf32>
      tpu.vector_store %arg4[%c0_20, %c0_21], %35 {strides = array<i32>} : memref<8x128xf32, #tpu.memory_space<vmem>>, vector<8x128xf32>,
    } else {
    }
    return
  }
  func.func @transform_0(%arg0: i32) -> (i32, i32) {
    %c0_i32 = arith.constant 0 : i32
    %c0_i32_0 = arith.constant 0 : i32
    return %arg0, %c0_i32 : i32, i32
  }
  func.func @transform_1(%arg0: i32) -> (i32, i32) {
    %c0_i32 = arith.constant 0 : i32
    %c0_i32_0 = arith.constant 0 : i32
    return %arg0, %c0_i32 : i32, i32
  }
  func.func @transform_2(%arg0: i32) -> (i32, i32) {
    %c0_i32 = arith.constant 0 : i32
    %c0_i32_0 = arith.constant 0 : i32
    return %arg0, %c0_i32 : i32, i32
  }
  func.func @transform_3(%arg0: i32) -> (i32, i32) {
    %c0_i32 = arith.constant 0 : i32
    %c0_i32_0 = arith.constant 0 : i32
    %c0_i32_1 = arith.constant 0 : i32
    return %c0_i32, %c0_i32_0 : i32, i32
  }
}

</mosaic_0001>

<bundles_post_ra>
// kernel: tpu_custom_call.1
= control target key start
LH: loop header
LB: loop body
LE: loop exit
PB: predicated region body
PF: predicated region fallthrough
CT: control target
= control target key end

     0   :  { %8 = vsyncpa [#allocation4], 0  ;;  %s211_s0 = inlined_call_operand.vmem [shape: f32[8,32], index: 0, kind: input, shape index: {}]   ;;  %s212_s1 = inlined_call_operand.hbm [shape: f32[8,32], index: 1, kind: input, shape index: {}]   ;;  %s213_s2 = inlined_call_operand.vmem [shape: f32[8,1], index: 2, kind: input, shape index: {}]   ;;  %s214_s3 = inlined_call_operand.hbm [shape: f32[8,128], index: 3, kind: output, shape index: {}]  }
   0x1   :  { %9 = vsyncpa [#allocation5], 0  ;;  %s155_s12 = smov [#allocation3]   ;;  %s107_s16 = scalar_lea.hbm %s212_s1, 128 }
   0x2   :  { %s18_s13 = sshll.u32 %s155_s12, 4  ;;  %p108_p0 = scmp.ne.s32.totalorder %s212_s1, %s107_s16  ;;  %s19_s13 = int_to_ptr.vmem [resolvable:$true] %s18_s13 }
   0x3   :  { %p111_p1 = scmp.lt.u32.totalorder %s107_s16, %s212_s1 }
   0x5   :  { %p113_p2 = pnand %p111_p1, %p108_p0 }
   0x7   :  { %116 = shalt.err (!%p113_p2)
}
   0x8   :  { %s117_s21 = scalar_lea.vmem %s19_s13, 128  ;;  %p122_p4 = scmp.lt.s32.totalorder %s19_s13, %s19_s13 }
   0x9   :  { %p118_p3 = scmp.ne.s32.totalorder %s19_s13, %s117_s21  ;;  %p123_p5 = scmp.lt.s32.totalorder %s117_s21, %s117_s21 }
   0xb   :  { %p124_p6 = por %p123_p5, %p122_p4 }
   0xd   :  { %p125_p7 = pnand %p124_p6, %p118_p3 }
   0xf   :  { %128 = shalt.err (!%p125_p7)
}
  0x10   :  { %21 = dma.hbm_to_vmem [thread:$0]  %s212_s1, 128, %s19_s13, [#allocation4]  }
  0x11   :  { %151 = dma.done.wait [#allocation4], 128  }
  0x12   :  { %152 = vsyncadd [#allocation4], 4294967168  ;;  %vm31_vm0 = vcmask 0   ;;  %v156_v0 = vmov 0.0   ;;  %v33_v1 = vld [vmem:[%s211_s0] sm:$0xff]  ;;  %vm39_vm1 = vcmask 261120  }
  0x13   :  { %32 = vst.msk [vmem:[#allocation2] sm:$0x1] %vm31_vm0, %v156_v0  ;;  %v34_v2 = vld [vmem:[#allocation3] sm:$0xff]  ;;  %v157_v7 = vmov 0   ;;  %vm59_vm4 = vcmask 7168  }
  0x14   :  { %v36_v3 = vsub.f32 %v33_v1, %v34_v2  ;;  %104 = vset.pattern.permute.xlu0 %v157_v7  ;;  %v35_v15 = vld [vmem:[%s213_s2] sm:$0xff]  ;;  %s158_s2 = smov [#allocation6]  }
  0x15   :  { %v53_v16 = vsub.f32 1.0, %v35_v15  ;;  %s90_s26 = sshll.u32 %s158_s2, 4  ;;  %s91_s26 = int_to_ptr.vmem [resolvable:$true] %s90_s26 }
  0x16   :  { %v37_v4 = vadd.f32 1e-06, %v36_v3  ;;  %s129_s27 = scalar_lea.vmem %s91_s26, 128  ;;  %p134_p9 = scmp.lt.s32.totalorder %s91_s26, %s91_s26 }
  0x17   :  { %p130_p8 = scmp.ne.s32.totalorder %s91_s26, %s129_s27  ;;  %p135_p10 = scmp.lt.s32.totalorder %s129_s27, %s129_s27 }
  0x18   :  { %v38_v5 = vmul.f32 %v37_v4, %v37_v4 }
  0x19   :  { %p136_p11 = por %p135_p10, %p134_p9 }
  0x1a   :  { %v40_v6 = vsel %vm39_vm1, %v38_v5, 0.0  ;;  %v58_v29 = vld [vmem:[#allocation2] sm:$0x1] }
  0x1b   :  { %41 = vadd.xlane.f32.xlu0 %v40_v6  ;;  %p137_p12 = pnand %p136_p11, %p130_p8 }
  0xa8   :  { %v42_v8 = vpop.xlane.xlu0 %41 }
  0xa9   :  { %105 = vrsqrt.f32 %v42_v8  ;;  %vm45_vm2 = vcmp.eq.f32.partialorder %v42_v8, inf  ;;  %v48_v11 = vand.u32 2147483648, %v42_v8  ;;  %vm47_vm3 = vcmp.eq.f32.partialorder %v42_v8, 0.0 }
  0xaa   :  { %v52_v19 = vmul.f32 %v42_v8, %v35_v15 }
  0xb3   :  { %v106_v9 = vpop.eup %105 }
  0xb4   :  { %v44_v10 = vmul.f32 %v106_v9, %v42_v8 }
  0xb6   :  { %v46_v12 = vsel %vm45_vm2, %v42_v8, %v44_v10 }
  0xb7   :  { %v49_v13 = vsel %vm47_vm3, %v48_v11, %v46_v12 }
  0xb8   :  { %v50_v14 = vsub.f32 2.0, %v49_v13 }
  0xba   :  { %v51_v17 = vmax.f32 %v50_v14, 0.0 }
  0xbc   :  { %v54_v18 = vmul.f32 %v51_v17, %v51_v17 }
  0xbe   :  { %v55_v20 = vmul.f32 %v54_v18, %v53_v16 }
  0xc0   :  { %v56_v21 = vadd.f32 %v55_v20, %v52_v19 }
  0xc2   :  { %v57_v22 = vmul.f32 0.5, %v56_v21 }
  0xc4   :  { %v60_v23 = vsel %vm59_vm4, %v57_v22, 0.0 }
  0xc5   :  { %v61_v24 = vrot.slane %v60_v23, 4 }
  0xc7   :  { %v62_v25 = vadd.f32 %v61_v24, %v60_v23 }
  0xc9   :  { %v63_v26 = vrot.slane %v62_v25, 2 }
  0xcb   :  { %v64_v27 = vadd.f32 %v63_v26, %v62_v25 }
  0xcd   :  { %v65_v28 = vrot.slane %v64_v27, 1 }
  0xcf   :  { %v66_v30 = vadd.f32 %v65_v28, %v64_v27 }
  0xd1   :  { %v67_v31 = vadd.f32 %v66_v30, %v58_v29 }
  0xd3   :  { %69 = vst.msk [vmem:[#allocation2] sm:$0x1] %vm31_vm0, %v67_v31 }
  0xda   :  { %v99_v32 = vld [vmem:[#allocation2] ss:$0 sm:$0xff] }
  0xdb   :  { %80 = vperm.xlu0 %104, %v99_v32  }
 0x15a   :  { %v81_v33 = vpop.permute.xlu0 %80 }
 0x15b   :  { %83 = vst [vmem:[#allocation6] sm:$0xff] %v81_v33 }
 0x15c   :  { %140 = shalt.err (!%p137_p12)
}
 0x15d   :  { %s141_s30 = scalar_lea.hbm %s214_s3, 128 }
 0x15e   :  { %p142_p13 = scmp.ne.s32.totalorder %s214_s3, %s141_s30  ;;  %p145_p0 = scmp.lt.u32.totalorder %s141_s30, %s214_s3 }
 0x160   :  { %p147_p1 = pnand %p145_p0, %p142_p13 }
 0x162   :  { %150 = shalt.err (!%p147_p1)
}
 0x163   :  { %93 = dma.vmem_to_hbm [thread:$0]  %s91_s26, 128, %s214_s3, [#allocation5]  }
 0x164   :  { %153 = dma.done.wait [#allocation5], 128  }
 0x165   :  { %154 = vsyncadd [#allocation5], 4294967168 }
 0x166   :  { %97 = vsyncpa [#allocation4], 1 }
 0x167   :  { %98 = vsyncpa [#allocation5], 1 }

</bundles_post_ra>
